<compile_context>
chip_gen: v7x
topology: tpu7x:2x2x1
jax: 0.10.0
libtpu: 0.0.40
codegen_flags: <defaults>
</compile_context>

<pallas_src>
import functools

import numpy as np
import jax
import jax.numpy as jnp
from jax.experimental import pallas as pl
from jax.experimental.pallas import tpu as pltpu


# ----------------------------------------------------------------------------
# Helpers
# ----------------------------------------------------------------------------
def _round_up(x, m):
    return ((x + m - 1) // m) * m


def _default_vmem_limit():
    """Per-generation scoped-VMEM budget: ~48MB on v7x (64MiB VMEM),
    ~96MB on v5e/v6e (128MiB VMEM)."""
    try:
        cap = int(pltpu.get_tpu_info().vmem_capacity_bytes)
    except Exception:
        cap = 128 * 1024 * 1024
    return max(32 * 1024 * 1024, min(cap * 3 // 4, 96 * 1024 * 1024))


_VMEM_LIMIT = _default_vmem_limit()


def _pick_tile(dim, target, align):
    """Return (tile, padded_dim). Prefer a tile that divides dim exactly so no
    HBM pad/slice copies are needed; pad only as a last resort."""
    if dim <= target:
        return dim, dim
    t = (target // align) * align
    while t >= align:
        if dim % t == 0:
            return t, dim
        t -= align
    t = (target // align) * align
    return t, _round_up(dim, t)


def _pick_divisor(dim, target):
    t = min(dim, target)
    while dim % t:
        t -= 1
    return t


def _pad2(x, rows, cols):
    r, c = x.shape
    if r == rows and c == cols:
        return x
    return jnp.pad(x, ((0, rows - r), (0, cols - c)))


def _gelu(y):
    # TODO(synk): tanh-approx GELU (tanh lowers to the EUP); PyTorch nn.GELU()
    # uses exact erf, which has no guaranteed Mosaic lowering.
    c = 0.7978845608028654  # sqrt(2/pi)
    return 0.5 * y * (1.0 + jnp.tanh(c * (y + 0.044715 * y * y * y)))


# ----------------------------------------------------------------------------
# Pallas kernels
# ----------------------------------------------------------------------------
def _linear1_kernel(x_ref, w_ref, *rest, has_bias, has_ln, has_residual, gelu):
    """Single K-block fused linear: optional LayerNorm prologue; bias / GELU /
    residual epilogue. bf16 MXU operands, f32 accumulation & statistics.
    No scratch accumulator needed."""
    i = 0
    b_ref = g_ref = be_ref = r_ref = None
    if has_bias:
        b_ref = rest[i]; i += 1
    if has_ln:
        g_ref, be_ref = rest[i], rest[i + 1]; i += 2
    if has_residual:
        r_ref = rest[i]; i += 1
    o_ref = rest[i]

    if has_ln:
        xf = x_ref[...].astype(jnp.float32)
        mean = jnp.mean(xf, axis=-1, keepdims=True)
        var = jnp.mean(jnp.square(xf - mean), axis=-1, keepdims=True)
        xf = (xf - mean) * jax.lax.rsqrt(var + 1e-5)
        xf = xf * g_ref[...].astype(jnp.float32) + be_ref[...].astype(jnp.float32)
        xm = xf.astype(jnp.bfloat16)
    else:
        xm = x_ref[...].astype(jnp.bfloat16)

    y = jnp.dot(xm, w_ref[...], preferred_element_type=jnp.float32)
    if has_bias:
        y = y + b_ref[...].astype(jnp.float32)
    if gelu:
        y = _gelu(y)
    if has_residual:
        y = y + r_ref[...].astype(jnp.float32)
    o_ref[...] = y.astype(o_ref.dtype)


def _lineark_kernel(x_ref, w_ref, *rest, n_k, has_bias, has_residual, gelu):
    """K-tiled linear. The f32 output block is resident across the k axis and
    doubles as the accumulator (no VMEM scratch)."""
    i = 0
    b_ref = r_ref = None
    if has_bias:
        b_ref = rest[i]; i += 1
    if has_residual:
        r_ref = rest[i]; i += 1
    o_ref = rest[i]

    kk = pl.program_id(2)

    @pl.when(kk == 0)
    def _init():
        if has_bias:
            o_ref[...] = jnp.broadcast_to(
                b_ref[...].astype(jnp.float32), o_ref.shape)
        else:
            o_ref[...] = jnp.zeros_like(o_ref)

    o_ref[...] += jnp.dot(x_ref[...].astype(jnp.bfloat16), w_ref[...],
                          preferred_element_type=jnp.float32)

    if has_residual or gelu:
        @pl.when(kk == n_k - 1)
        def _finalize():
            y = o_ref[...]
            if gelu:
                y = _gelu(y)
            if has_residual:
                y = y + r_ref[...].astype(jnp.float32)
            o_ref[...] = y


def _window_attn_kernel(q_ref, k_ref, v_ref, bias_ref, o_ref, *, scale):
    """(q*scale)@k^T + per-window bias -> softmax (f32, approx reciprocal on
    the EUP) -> @v.  q/k/v blocks are (1, bt, nt, n, d) bf16 slices of the
    single windowed qkv tensor; the bias (nt, n, n) broadcasts implicitly over
    the bt (batch*heads) tile."""
    bt, nt, n, d = o_ref.shape
    g = bt * nt
    q = (q_ref[0] * scale).reshape(g, n, d)          # stays bf16
    k = k_ref[0].reshape(g, n, d)
    v = v_ref[0].reshape(g, n, d)

    dots = jnp.einsum("gid,gjd->gij", q, k,
                      preferred_element_type=jnp.float32)
    dots = dots.reshape(bt, nt, n, n) + bias_ref[...][None]   # implicit bcast
    m = jnp.max(dots, axis=-1, keepdims=True)
    p = jnp.exp(dots - m)
    denom = jnp.sum(p, axis=-1, keepdims=True)
    attn = (p * pl.reciprocal(denom, approx=True)).reshape(g, n, n)

    out = jnp.einsum("gij,gjd->gid", attn.astype(v.dtype), v,
                     preferred_element_type=jnp.float32)
    o_ref[...] = out.reshape(bt, nt, n, d).astype(o_ref.dtype)


# ----------------------------------------------------------------------------
# Pallas wrappers
# ----------------------------------------------------------------------------
def fused_linear(x, w, b=None, *, ln=None, residual=None, gelu=False,
                 out_dtype=jnp.float32):
    """y = [LN(x)] @ w (+ b) [-> GELU] [+ residual], Pallas tiled.

    x: [..., K]; w: [K, N] bf16; b: [N] f32 or None; ln: (gamma, beta) over K;
    residual: [..., N].  MXU operands are bf16, accumulation/statistics f32."""
    orig_shape = x.shape
    K = orig_shape[-1]
    N = w.shape[1]
    x2 = x.reshape(-1, K)
    M = x2.shape[0]

    has_bias = b is not None
    has_ln = ln is not None
    has_residual = residual is not None

    # --- tile selection (exact divisors -> no pad/slice in the common case) --
    tn, Np = _pick_tile(N, 512, 128)
    if has_ln:
        tk, Kp = K, K                 # LN prologue needs the full feature row
    else:
        tk, Kp = _pick_tile(K, 2048, 128)
    tm_t = 512
    while tm_t > 16 and (2 * tm_t * Kp * 4 + 2 * Kp * tn * 2
                         + 3 * tm_t * tn * 4) > _VMEM_LIMIT:
        tm_t //= 2
    tm, Mp = _pick_tile(M, tm_t, 8)
    if Mp == tm and tm >= 512 and tm % 16 == 0:
        tm //= 2                      # >=2 blocks on the parallel M axis (v7x)
    n_k = Kp // tk

    xp = _pad2(x2, Mp, Kp)
    wp = _pad2(w, Kp, Np)
    inputs = [xp, wp]
    out_shape = jax.ShapeDtypeStruct((Mp, Np), out_dtype)

    if n_k == 1:
        specs = [pl.BlockSpec((tm, Kp), lambda i, j: (i, 0)),
                 pl.BlockSpec((Kp, tn), lambda i, j: (0, j))]
        if has_bias:
            inputs.append(_pad2(b.reshape(1, N), 1, Np))
            specs.append(pl.BlockSpec((1, tn), lambda i, j: (0, j)))
        if has_ln:
            gamma, beta = ln
            inputs += [gamma.reshape(1, K), beta.reshape(1, K)]
            specs += [pl.BlockSpec((1, K), lambda i, j: (0, 0)),
                      pl.BlockSpec((1, K), lambda i, j: (0, 0))]
        if has_residual:
            inputs.append(_pad2(residual.reshape(-1, N), Mp, Np))
            specs.append(pl.BlockSpec((tm, tn), lambda i, j: (i, j)))
        out = pl.pallas_call(
            functools.partial(_linear1_kernel, has_bias=has_bias,
                              has_ln=has_ln, has_residual=has_residual,
                              gelu=gelu),
            out_shape=out_shape,
            grid=(Mp // tm, Np // tn),
            in_specs=specs,
            out_specs=pl.BlockSpec((tm, tn), lambda i, j: (i, j)),
            compiler_params=pltpu.CompilerParams(
                dimension_semantics=("parallel", "parallel"),
                vmem_limit_bytes=_VMEM_LIMIT),
        )(*inputs)
    else:
        assert not has_ln, "LN prologue requires a single K block"
        assert out_dtype == jnp.float32, "k-tiled path accumulates into o_ref"
        specs = [pl.BlockSpec((tm, tk), lambda i, j, k: (i, k)),
                 pl.BlockSpec((tk, tn), lambda i, j, k: (k, j))]
        if has_bias:
            inputs.append(_pad2(b.reshape(1, N), 1, Np))
            specs.append(pl.BlockSpec((1, tn), lambda i, j, k: (0, j)))
        if has_residual:
            inputs.append(_pad2(residual.reshape(-1, N), Mp, Np))
            specs.append(pl.BlockSpec((tm, tn), lambda i, j, k: (i, j)))
        out = pl.pallas_call(
            functools.partial(_lineark_kernel, n_k=n_k, has_bias=has_bias,
                              has_residual=has_residual, gelu=gelu),
            out_shape=out_shape,
            grid=(Mp // tm, Np // tn, n_k),
            in_specs=specs,
            out_specs=pl.BlockSpec((tm, tn), lambda i, j, k: (i, j)),
            compiler_params=pltpu.CompilerParams(
                dimension_semantics=("parallel", "parallel", "arbitrary"),
                vmem_limit_bytes=_VMEM_LIMIT),
        )(*inputs)

    if Mp != M or Np != N:
        out = out[:M, :N]
    return out.reshape(orig_shape[:-1] + (N,))


def window_attention_core(qkv, bias, scale):
    """qkv: [3, BH, nw, ws^2, head_dim] bf16; bias: [nw, ws^2, ws^2] f32
    (rel-pos bias + shift masks).  Returns [BH, nw, ws^2, head_dim]."""
    _, BH, nw, n, d = qkv.shape
    bt = _pick_divisor(BH, 8)        # modest tiles: fits v7x's 64 MiB VMEM
    nt = _pick_divisor(nw, 32)

    out = pl.pallas_call(
        functools.partial(_window_attn_kernel, scale=scale),
        out_shape=jax.ShapeDtypeStruct((BH, nw, n, d), qkv.dtype),
        # window axis outer so the per-window bias block stays resident while
        # the batch*heads axis streams.
        grid=(nw // nt, BH // bt),
        in_specs=[
            pl.BlockSpec((1, bt, nt, n, d), lambda j, i: (0, i, j, 0, 0)),
            pl.BlockSpec((1, bt, nt, n, d), lambda j, i: (1, i, j, 0, 0)),
            pl.BlockSpec((1, bt, nt, n, d), lambda j, i: (2, i, j, 0, 0)),
            pl.BlockSpec((nt, n, n), lambda j, i: (j, 0, 0)),
        ],
        out_specs=pl.BlockSpec((bt, nt, n, d), lambda j, i: (i, j, 0, 0)),
        compiler_params=pltpu.CompilerParams(
            dimension_semantics=("parallel", "parallel"),
            vmem_limit_bytes=_VMEM_LIMIT),
    )(qkv, qkv, qkv, bias)
    return out


# ----------------------------------------------------------------------------
# Swin building blocks (JAX glue + Pallas kernels)
# ----------------------------------------------------------------------------
def create_mask(window_size, displacement, upper_lower, left_right):
    ws = window_size
    mask = np.zeros((ws * ws, ws * ws), dtype=np.float32)
    if upper_lower:
        mask[-displacement * ws:, :-displacement * ws] = -np.inf
        mask[:-displacement * ws, -displacement * ws:] = -np.inf
    if left_right:
        mask = mask.reshape(ws, ws, ws, ws)
        mask[:, -displacement:, :, :-displacement] = -np.inf
        mask[:, :-displacement, :, -displacement:] = -np.inf
        mask = mask.reshape(ws * ws, ws * ws)
    return jnp.asarray(mask)


def get_relative_indices(window_size):
    idx = np.array([[x, y] for x in range(window_size)
                    for y in range(window_size)])
    dist = idx[None, :, :] - idx[:, None, :]
    return jnp.asarray(dist + window_size - 1)


def patch_merging(x, w, b, downscaling_factor):
    # Equivalent to nn.Unfold(k=d, stride=d) + view + permute + Linear.
    B, C, H, W = x.shape
    d = downscaling_factor
    nh, nw = H // d, W // d
    x = x.reshape(B, C, nh, d, nw, d)
    x = jnp.transpose(x, (0, 2, 4, 1, 3, 5))       # B, nh, nw, C, d, d
    x = x.reshape(B, nh, nw, C * d * d)            # feature order = (c, kh, kw)
    return fused_linear(x, w, b)


def window_attention(x, blk, heads, head_dim, window_size, rel_indices, masks):
    """Residual(PreNorm(WindowAttention)):  out = WA(LN1(x)) + x.
    LN1 is fused into to_qkv; bias + residual are fused into to_out."""
    b, n_h, n_w, _ = x.shape
    ws = window_size
    disp = ws // 2
    shifted = blk["shifted"]

    if shifted:
        # roll once; the rolled x serves as both the LN input and the residual
        # (the back-shift at the end restores the original frame).
        x = jnp.roll(x, shift=(-disp, -disp), axis=(1, 2))
    residual = x

    # LN1 fused as prologue of the qkv projection; bf16 output halves the
    # window-reshuffle HBM traffic.
    qkv = fused_linear(x, blk["to_qkv"][0], None, ln=blk["ln1"],
                       out_dtype=jnp.bfloat16)     # [b, n_h, n_w, 3*inner]

    nw_h, nw_w = n_h // ws, n_w // ws
    nw = nw_h * nw_w
    n = ws * ws

    # single rearrangement of the combined qkv tensor (no jnp.split copies)
    qkv = qkv.reshape(b, nw_h, ws, nw_w, ws, 3, heads, head_dim)
    qkv = jnp.transpose(qkv, (5, 0, 6, 1, 3, 2, 4, 7))
    qkv = qkv.reshape(3, b * heads, nw, n, head_dim)

    # relative position bias + shift masks, built once per window (JAX glue)
    pos_bias = blk["pos_embedding"][rel_indices[:, :, 0], rel_indices[:, :, 1]]
    bias = jnp.broadcast_to(pos_bias, (nw, n, n))
    if shifted:
        ul, lr = masks
        widx = jnp.arange(nw)
        last_row = (widx >= nw - nw_w)[:, None, None]
        last_col = ((widx % nw_w) == nw_w - 1)[:, None, None]
        bias = bias + jnp.where(last_row, ul, 0.0) + jnp.where(last_col, lr, 0.0)
    bias = bias.astype(jnp.float32)

    scale = head_dim ** (-0.5)
    out = window_attention_core(qkv, bias, scale)   # [BH, nw, n, d] bf16

    out = out.reshape(b, heads, nw_h, nw_w, ws, ws, head_dim)
    out = jnp.transpose(out, (0, 2, 4, 3, 5, 1, 6)).reshape(
        b, n_h, n_w, heads * head_dim)
    # bias + residual fused into the to_out matmul epilogue (f32 stream)
    out = fused_linear(out, blk["to_out"][0], blk["to_out"][1],
                       residual=residual)

    if shifted:
        out = jnp.roll(out, shift=(disp, disp), axis=(1, 2))
    return out


def feed_forward(x, blk, residual):
    # Residual(PreNorm(FeedForward)): LN2 + ff1 + GELU fused into one kernel
    # (bf16 hidden), bias + residual fused into the ff2 epilogue.
    h = fused_linear(x, blk["ff1"][0], blk["ff1"][1], ln=blk["ln2"],
                     gelu=True, out_dtype=jnp.bfloat16)
    return fused_linear(h, blk["ff2"][0], blk["ff2"][1], residual=residual)


def swin_block(x, blk, heads, head_dim, window_size, rel_indices, masks):
    x = window_attention(x, blk, heads, head_dim, window_size,
                         rel_indices, masks)          # LN1 + residual fused
    x = feed_forward(x, blk, residual=x)              # LN2 + residual fused
    return x


def stage_forward(x, stage, head_dim, window_size, rel_indices, masks):
    x = patch_merging(x, stage["patch_merge"][0], stage["patch_merge"][1],
                      stage["downscaling_factor"])
    for blk in stage["blocks"]:
        x = swin_block(x, blk, stage["num_heads"], head_dim, window_size,
                       rel_indices, masks)
    return jnp.transpose(x, (0, 3, 1, 2))             # back to NCHW


def swin_forward(img, stages, head, head_dim, window_size, rel_indices, masks):
    x = img
    for stage in stages:
        x = stage_forward(x, stage, head_dim, window_size, rel_indices, masks)
    x = jnp.mean(x, axis=(2, 3))                      # global average pool
    # final LayerNorm fused as prologue of the classifier matmul
    return fused_linear(x, head["linear"][0], head["linear"][1], ln=head["ln"])


# ----------------------------------------------------------------------------
# Deterministic parameter init (weights stored bf16 for the MXU, rest f32)
# ----------------------------------------------------------------------------
class KeyGen:
    def __init__(self, seed=0):
        self.key = jax.random.PRNGKey(seed)

    def __call__(self):
        self.key, k = jax.random.split(self.key)
        return k


def init_linear(kg, fan_in, fan_out, bias=True):
    w = (0.02 * jax.random.normal(kg(), (fan_in, fan_out), jnp.float32)
         ).astype(jnp.bfloat16)
    b = jnp.zeros((fan_out,), jnp.float32) if bias else None
    return (w, b)


def init_swin_params(kg, *, hidden_dim, layers, heads, channels, num_classes,
                     head_dim, window_size, downscaling_factors):
    dims = [hidden_dim, hidden_dim * 2, hidden_dim * 4, hidden_dim * 8]
    stages = []
    in_ch = channels
    for s in range(4):
        hd = dims[s]
        df = downscaling_factors[s]
        stage = {
            "downscaling_factor": df,
            "num_heads": heads[s],
            "patch_merge": init_linear(kg, in_ch * df * df, hd),
            "blocks": [],
        }
        inner = heads[s] * head_dim
        for _ in range(layers[s] // 2):
            for shifted in (False, True):
                blk = {
                    "shifted": shifted,
                    "ln1": (jnp.ones((hd,), jnp.float32),
                            jnp.zeros((hd,), jnp.float32)),
                    "to_qkv": init_linear(kg, hd, inner * 3, bias=False),
                    "pos_embedding": jax.random.normal(
                        kg(), (2 * window_size - 1, 2 * window_size - 1),
                        jnp.float32),
                    "to_out": init_linear(kg, inner, hd),
                    "ln2": (jnp.ones((hd,), jnp.float32),
                            jnp.zeros((hd,), jnp.float32)),
                    "ff1": init_linear(kg, hd, hd * 4),
                    "ff2": init_linear(kg, hd * 4, hd),
                }
                stage["blocks"].append(blk)
        stages.append(stage)
        in_ch = hd
    head = {
        "ln": (jnp.ones((dims[3],), jnp.float32),
               jnp.zeros((dims[3],), jnp.float32)),
        "linear": init_linear(kg, dims[3], num_classes),
    }
    return stages, head


# ----------------------------------------------------------------------------
if __name__ == "__main__":
    # Small config consistent with the module's constructor.
    hidden_dim = 16
    layers = (2, 2, 2, 2)
    heads = (2, 2, 2, 2)
    channels = 3
    num_classes = 10
    head_dim = 8
    window_size = 2
    downscaling_factors = (2, 2, 2, 2)

    kg = KeyGen(0)
    stages, head = init_swin_params(
        kg, hidden_dim=hidden_dim, layers=layers, heads=heads,
        channels=channels, num_classes=num_classes, head_dim=head_dim,
        window_size=window_size, downscaling_factors=downscaling_factors)

    rel_indices = get_relative_indices(window_size)
    disp = window_size // 2
    masks = (create_mask(window_size, disp, True, False),
             create_mask(window_size, disp, False, True))

    img = jax.random.normal(jax.random.PRNGKey(0), (2, channels, 32, 32),
                            jnp.float32)

    out = swin_forward(img, stages, head, head_dim, window_size,
                       rel_indices, masks)
    out = jax.block_until_ready(out)
    assert out.shape == (2, num_classes)
    assert bool(jnp.all(jnp.isfinite(out)))
    print("KERNEL_OK")
</pallas_src>

<mosaic_0001>
module attributes {stable_mosaic.version = 11 : i64} {
  func.func @_linear1_kernel(%arg0: i32, %arg1: i32, %arg2: memref<256x12xf32, #tpu.memory_space<vmem>>, %arg3: memref<12x16xbf16, #tpu.memory_space<vmem>>, %arg4: memref<1x16xf32, #tpu.memory_space<vmem>>, %arg5: memref<256x16xf32, #tpu.memory_space<vmem>>) attributes {dimension_semantics = [#tpu.dimension_semantics<parallel>, #tpu.dimension_semantics<parallel>], iteration_bounds = array<i64: 2, 1>, scalar_prefetch = 0 : i64, scratch_operands = 0 : i64, tpu.core_type = #tpu.core_type<tc>, window_params = [{transform_indices = @transform_0, window_bounds = array<i64: 256, 12>}, {transform_indices = @transform_1, window_bounds = array<i64: 12, 16>}, {transform_indices = @transform_2, window_bounds = array<i64: 1, 16>}, {transform_indices = @transform_3, window_bounds = array<i64: 256, 16>}]} {
    %c0 = arith.constant 0 : index
    %c0_0 = arith.constant 0 : index
    %0 = vector.load %arg2[%c0, %c0_0] : memref<256x12xf32, #tpu.memory_space<vmem>>, vector<256x12xf32>
    %1 = arith.truncf %0 : vector<256x12xf32> to vector<256x12xbf16>
    %c0_1 = arith.constant 0 : index
    %c0_2 = arith.constant 0 : index
    %2 = vector.load %arg3[%c0_1, %c0_2] : memref<12x16xbf16, #tpu.memory_space<vmem>>, vector<12x16xbf16>
    %cst = arith.constant dense<0.000000e+00> : vector<256x16xf32>
    %3 = tpu.matmul %1, %2, %cst {dimension_numbers = #tpu.dot_dimension_numbers<[1], [0], [0], [1], [0, 0, 1, 1], [], []>} : vector<256x12xbf16>, vector<12x16xbf16>, vector<256x16xf32> -> vector<256x16xf32>
    %c0_3 = arith.constant 0 : index
    %c0_4 = arith.constant 0 : index
    %4 = vector.load %arg4[%c0_3, %c0_4] : memref<1x16xf32, #tpu.memory_space<vmem>>, vector<1x16xf32>
    %5 = vector.broadcast %4 : vector<1x16xf32> to vector<256x16xf32>
    %6 = arith.addf %3, %5 : vector<256x16xf32>
    %c0_5 = arith.constant 0 : index
    %c0_6 = arith.constant 0 : index
    %7 = vector.load %arg5[%c0_5, %c0_6] : memref<256x16xf32, #tpu.memory_space<vmem>>, vector<256x16xf32>
    tpu.vector_store %arg5[%c0_5, %c0_6], %6 {strides = array<i32>} : memref<256x16xf32, #tpu.memory_space<vmem>>, vector<256x16xf32>,
    return
  }
  func.func @transform_0(%arg0: i32, %arg1: i32) -> (i32, i32) {
    %c0_i32 = arith.constant 0 : i32
    %c0_i32_0 = arith.constant 0 : i32
    return %arg0, %c0_i32 : i32, i32
  }
  func.func @transform_1(%arg0: i32, %arg1: i32) -> (i32, i32) {
    %c0_i32 = arith.constant 0 : i32
    %c0_i32_0 = arith.constant 0 : i32
    return %c0_i32, %arg1 : i32, i32
  }
  func.func @transform_2(%arg0: i32, %arg1: i32) -> (i32, i32) {
    %c0_i32 = arith.constant 0 : i32
    %c0_i32_0 = arith.constant 0 : i32
    return %c0_i32, %arg1 : i32, i32
  }
  func.func @transform_3(%arg0: i32, %arg1: i32) -> (i32, i32) {
    %c0_i32 = arith.constant 0 : i32
    return %arg0, %arg1 : i32, i32
  }
}

</mosaic_0001>

<bundles_post_ra>
// kernel: tpu_custom_call.1
= control target key start
LH: loop header
LB: loop body
LE: loop exit
PB: predicated region body
PF: predicated region fallthrough
CT: control target
= control target key end

     0   :  { %8 = vsyncpa [#allocation3], 0  ;;  %s1476_s0 = inlined_call_operand.hbm [shape: f32[512,12], index: 0, kind: input, shape index: {}]   ;;  %s1477_s1 = inlined_call_operand.hbm [shape: bf16[12,16], index: 1, kind: input, shape index: {}]   ;;  %s1478_s2 = inlined_call_operand.hbm [shape: f32[1,16], index: 2, kind: input, shape index: {}]   ;;  %s1479_s3 = inlined_call_operand.hbm [shape: f32[512,16], index: 3, kind: output, shape index: {}]  }
   0x1   :  { %10 = vsyncpa [#allocation3 + $0x1], 0 }
   0x2   :  { %11 = vsyncpa [#allocation6], 0 }
   0x3   :  { %12 = vsyncpa [#allocation4], 0 }
   0x4   :  { %14 = vsyncpa [#allocation4 + $0x1], 0  ;;  %s1065_s12 = smov 0   ;;  %s1067_s13 = smov 0  }
   0x5   :  { %s1069_s14 = smov 0   ;;  %s1071_s15 = smov 0  }
   0x6   :  { %s1073_s16 = smov 0   ;;  %s1075_s17 = smov 0  }
   0x7 LB: > { %s677_s18 = sadd.s32 4294967295, %s1033_s17   ;;  %s678_s19 = sadd.s32 4294967294, %s1033_s17   ;;  %s1033_s17 = sphi %s1075_s17, %s20_s17   ;;  %s1029_s16 = sphi %s1073_s16, %s1501_s16   ;;  %s1025_s15 = sphi %s1071_s15, %s1500_s15   ;;  %s1021_s14 = sphi %s1069_s14, %s1499_s14   ;;  %s1017_s13 = sphi %s1067_s13, %s1498_s13   ;;  %s1013_s12 = sphi %s1065_s12, %s1497_s12  }
   0x8   : > { %p52_p0 = scmp.ne.s32.totalorder %s1017_s13, %s1013_s12  ;;  %p1099_p1 = scmp.eq.s32.totalorder %s677_s18, 0 }
   0x9   : > { %p1103_p2 = scmp.eq.s32.totalorder %s677_s18, 1  ;;  %p136_p3 = scmp.eq.s32.totalorder %s678_s19, 1 }
   0xa   : > { %s1484_s20 = scalar_select %p1099_p1, 1, 0 }
   0xb   : > { %p1109_p4 = por %p1099_p1, %p52_p0  ;;  %p679_p5 = scmp.ge.s32.totalorder %s1033_s17, 1 }
   0xc   : > { %p1114_p6 = por %p136_p3, %p52_p0  ;;  %p143_p7 = scmp.lt.s32.totalorder %s1033_s17, 3 }
   0xd   : > { %s1486_s22 = scalar_select %p1109_p4, 1, 0 }
   0xe   : > { %s1487_s23 = scalar_select %p1114_p6, 1, 0 }
   0xf   : > { %p1119_p8 = pnand %p679_p5, %p143_p7  ;;  %s1035_s25 = smov [#allocation5]  }
  0x10   : > { %s157_s26 = sshll.u32 %s1035_s25, 4  ;;  %s1036_s28 = smov [#allocation7]   ;;  %s1123_s26 = int_to_ptr.vmem [resolvable:$true] %s157_s26 }
  0x11   : > { %p783_p9 = pneg %p1119_p8  ;;  %s173_s29 = sshll.u32 %s1036_s28, 4  ;;  %s1134_s29 = int_to_ptr.vmem [resolvable:$true] %s173_s29 }
  0x12   : > { %s861_s5 = scalar_lea.hbm %s1477_s1, 128 }
  0x13   : > { %p1130_p11 = pnand %p783_p9, %p1099_p1  ;;  %p862_p12 = scmp.ne.s32.totalorder %s1477_s1, %s861_s5 }
  0x14   : > { %p868_p5 = scmp.lt.u32.totalorder %s861_s5, %s1477_s1 }
  0x15   : > { %p863_p13 = pneg %p1130_p11 }
  0x17   : > { %p864_p0 = pnand %p863_p13, %p862_p12 }
  0x19   : > { %p865_p3 = pneg %p864_p0 }
  0x1b   : > { %p870_p7 = pnand %p868_p5, %p865_p3 }
  0x1d   : > { %873 = shalt.err (!%p870_p7)
}
  0x1e   : > { %s874_s10 = scalar_lea.vmem %s1123_s26, 128  ;;  %p882_p1 = scmp.lt.s32.totalorder %s1123_s26, %s1123_s26 }
  0x1f   : > { %p875_p9 = scmp.ne.s32.totalorder %s1123_s26, %s874_s10  ;;  %p883_p12 = scmp.lt.s32.totalorder %s874_s10, %s874_s10 }
  0x21   : > { %p877_p10 = pnand %p875_p9, %p863_p13  ;;  %p884_p0 = por %p883_p12, %p882_p1 }
  0x23   : > { %p878_p6 = pneg %p877_p10 }
  0x25   : > { %p885_p4 = pnand %p884_p0, %p878_p6 }
  0x27   : > { %888 = shalt.err (!%p885_p4)
}
  0x28   : > { %s1037_s11 = smov 64   ;;  %s1038_s18 = smov 4  }
  0x29   : > { %786 = dma.hbm_to_vmem [thread:$0]  (!%p1130_p11), %s1477_s1, 128, %s1123_s26, [#allocation6], %s1037_s11, %s1037_s11, %s1038_s18  }
  0x2a   : > { %s889_s4 = scalar_lea.hbm %s1478_s2, 16 }
  0x2b   : > { %p890_p1 = scmp.ne.s32.totalorder %s1478_s2, %s889_s4  ;;  %p896_p10 = scmp.lt.u32.totalorder %s889_s4, %s1478_s2 }
  0x2d   : > { %p892_p4 = pnand %p890_p1, %p863_p13 }
  0x2f   : > { %p893_p6 = pneg %p892_p4 }
  0x31   : > { %p898_p3 = pnand %p896_p10, %p893_p6 }
  0x33   : > { %901 = shalt.err (!%p898_p3)
}
  0x34   : > { %s902_s26 = scalar_lea.vmem %s1134_s29, 16  ;;  %s909_s9 = scalar_lea.vmem %s1134_s29, 32 }
  0x35   : > { %p903_p5 = scmp.ne.s32.totalorder %s1134_s29, %s902_s26  ;;  %p910_p12 = scmp.lt.s32.totalorder %s1134_s29, %s1134_s29 }
  0x36   : > { %p911_p0 = scmp.lt.s32.totalorder %s909_s9, %s902_s26 }
  0x37   : > { %p905_p7 = pnand %p903_p5, %p863_p13 }
  0x38   : > { %p912_p1 = por %p911_p0, %p910_p12 }
  0x39   : > { %p906_p9 = pneg %p905_p7 }
  0x3b   : > { %p913_p4 = pnand %p912_p1, %p906_p9 }
  0x3d   : > { %916 = shalt.err (!%p913_p4)
}
  0x3e   : > { %789 = dma.hbm_to_vmem [thread:$0]  (!%p1130_p11), %s1478_s2, 16, %s1134_s29, [#allocation6]  }
  0x3f   : > { %s32_s18 = sadd.s32 1, %s1029_s16  ;;  %s39_s19 = sadd.s32 1, %s1021_s14 }
  0x40   : > { %p34_p13 = scmp.ge.s32.totalorder %s32_s18, 2  ;;  %p46_p6 = scmp.ne.s32.totalorder %s1021_s14, %s1017_s13 }
  0x41   : > { %p47_p10 = scmp.eq.s32.totalorder %s1033_s17, 0  ;;  %p800_p3 = scmp.lt.s32.totalorder %s1033_s17, 2 }
  0x42   : > { %s1503_s18 = smov (%p34_p13, %s32_s18), 0  ;;  %p1199_p7 = por %p1103_p2, %p46_p6 }
  0x43   : > { %p48_p5 = por %p47_p10, %p46_p6  ;;  %s36_s25 = ssub.s32 %s1029_s16, %s1503_s18 }
  0x44   : > { %s1490_s27 = scalar_select %p1199_p7, 1, 0 }
  0x45   : > { %s184_s28 = sand.u32 1, %s1021_s14   ;;  %p37_p9 = scmp.eq.s32.totalorder %s36_s25, 0 }
  0x46   : > { %s683_s29 = sshll.u32 %s184_s28, 8  ;;  %s714_s30 = sshll.u32 %s1029_s16, 12 }
  0x47   : > { %s1208_s4 = scalar_select %p37_p9, %s1021_s14, %s39_s19  }
  0x48   : > { %s1213_s7 = scalar_lea.hbm %s1476_s0, %s714_s30  ;;  %s188_s21 = scalar_lea.vmem [#allocation2], %s683_s29 }
  0x49   : > { %s195_s8 = sshll.u32 %s188_s21, 4  ;;  %p1217_p2 = pnand %p800_p3, %p48_p5  ;;  %s1221_s8 = int_to_ptr.vmem [resolvable:$true] %s195_s8 }
  0x4a   : > { %s1223_s9 = scalar_lea.sflag [#allocation3], %s184_s28  ;;  %s917_s10 = scalar_lea.hbm %s1213_s7, 4096 }
  0x4b   : > { %p918_p11 = scmp.ne.s32.totalorder %s1213_s7, %s917_s10  ;;  %p919_p12 = pneg %p1217_p2 }
  0x4c   : > { %s922_s25 = scalar_lea.hbm %s1476_s0, 8192  ;;  %p923_p4 = scmp.lt.u32.totalorder %s1213_s7, %s1476_s0 }
  0x4d   : > { %p920_p0 = pnand %p919_p12, %p918_p11  ;;  %p924_p13 = scmp.lt.u32.totalorder %s922_s25, %s917_s10 }
  0x4e   : > { %p926_p10 = scmp.lt.u32.totalorder %s917_s10, %s1213_s7 }
  0x4f   : > { %p921_p1 = pneg %p920_p0  ;;  %p925_p6 = por %p924_p13, %p923_p4 }
  0x51   : > { %p927_p3 = por %p926_p10, %p925_p6 }
  0x53   : > { %p928_p5 = pnand %p927_p3, %p921_p1 }
  0x55   : > { %931 = shalt.err (!%p928_p5)
}
  0x56   : > { %s932_s28 = scalar_lea.vmem %s1221_s8, 4096  ;;  %s1039_s5 = smov [#allocation2]  }
  0x57   : > { %p933_p9 = scmp.ne.s32.totalorder %s1221_s8, %s932_s28  ;;  %s937_s6 = sshll.u32 %s1039_s5, 4  ;;  %s938_s6 = int_to_ptr.vmem [resolvable:$false] %s937_s6 }
  0x58   : > { %s939_s21 = scalar_lea.vmem %s938_s6, 8192  ;;  %p940_p7 = scmp.lt.s32.totalorder %s1221_s8, %s938_s6 }
  0x59   : > { %p935_p11 = pnand %p933_p9, %p919_p12  ;;  %p941_p4 = scmp.lt.s32.totalorder %s939_s21, %s932_s28 }
  0x5b   : > { %p936_p0 = pneg %p935_p11  ;;  %p942_p13 = por %p941_p4, %p940_p7 }
  0x5d   : > { %p943_p6 = pnand %p942_p13, %p936_p0 }
  0x5f   : > { %946 = shalt.err (!%p943_p6)
}
  0x60   : > { %s1040_s10 = smov 128   ;;  %s1041_s11 = smov 8  }
  0x61   : > { %793 = dma.hbm_to_vmem [thread:$0]  (!%p1217_p2), %s1213_s7, 4096, %s1221_s8, %s1223_s9, %s1040_s10, %s1040_s10, %s1041_s11  }
  0x62   : > { %207 = sbr.rel (%p1119_p8) target bundleno = 371 (0x173), region = 32  ;;  %s1254_s19 = sand.u32 (!%p1119_p8), 1, %s1017_s13  }
  0x63   : > { %s687_s25 = sshll.u32 (!%p1119_p8), %s1254_s19, 8  ;;  %s210_s29 = scalar_lea.sflag (!%p1119_p8), [#allocation3], %s1254_s19 }
  0x64   : > { %s1260_s30 = scalar_lea.vmem (!%p1119_p8), [#allocation2], %s687_s25  ;;  %p1492_p7 = scmp.ne.s32.totalorder (!%p1119_p8), %s1486_s22, 0 }
  0x69   : > { %1000 = dma.done.wait (%p1492_p7), %s210_s29, 4096  }
  0x6a   : > { %1002 = vsyncadd (%p1492_p7), %s210_s29, 4294963200  ;;  %p1493_p2 = scmp.ne.s32.totalorder %s1484_s20, 0 }
  0x6c   : > { %1004 = dma.done.wait (%p1493_p2), [#allocation6], 144  }
  0x6d   : > { %1006 = vsyncadd (%p1493_p2), [#allocation6], 4294967152  ;;  %vm358_vm0 = vcmask 1045504   ;;  %v860_v0 = vld [vmem:[#allocation5] sm:$0x3f]   ;;  %v248_v2 = vld [vmem:[%s1260_s30 + $0x8] sm:$0xff] }
  0x6e   : > { %v247_v1 = vld [vmem:[%s1260_s30] sm:$0xff]  ;;  %vm309_vm1 = vcmask 97280   ;;  %769 = vmatprep.subr.msk.bf16.mxu0 %vm358_vm0, %v860_v0  ;;  %770 = vmatprep.subr.msk.bf16.mxu1 %vm358_vm0, %v860_v0  ;;  %v360_v4 = vsel %vm358_vm0, %v860_v0, 0  ;;  %v264_v6 = vld [vmem:[%s1260_s30 + $0x88] sm:$0xff]  ;;  %v249_v7 = vld [vmem:[%s1260_s30 + $0x10] sm:$0xff]  ;;  %vm523_vm2 = vcmask 130048  }
  0x6f   : > { %v263_v3 = vld [vmem:[%s1260_s30 + $0x80] sm:$0xff]  ;;  %v279_v5 = vpack.c.bf16 %v248_v2, %v247_v1  ;;  %v250_v8 = vld [vmem:[%s1260_s30 + $0x18] sm:$0xff]  ;;  %734 = vmatpush3.bf16.msra.mxu0 %v360_v4  ;;  %768 = vmatpush3.bf16.msra.mxu1 %v360_v4  ;;  %v265_v11 = vld [vmem:[%s1260_s30 + $0x90] sm:$0xff]  ;;  %s1326_s20 = scalar_lea.vmem [#allocation8], %s687_s25  ;;  %s715_s22 = sshll.u32 %s1025_s15, 12 }
  0x70   : > { %v287_v9 = vpack.c.bf16 %v264_v6, %v263_v3  ;;  %v280_v10 = vpack.c.bf16 %v250_v8, %v249_v7  ;;  %v266_v12 = vld [vmem:[%s1260_s30 + $0x98] sm:$0xff]  ;;  %v251_v13 = vld [vmem:[%s1260_s30 + $0x20] sm:$0xff]  ;;  %v252_v15 = vld [vmem:[%s1260_s30 + $0x28] sm:$0xff]  ;;  %s571_s24 = sshll.u32 %s1326_s20, 4  ;;  %s1411_s8 = scalar_lea.hbm %s1479_s3, %s715_s22  ;;  %s1413_s24 = int_to_ptr.vmem [resolvable:$true] %s571_s24 }
  0x71   : > { %735 = vmatprep.mubr.msk.bf16.mxu0 %vm309_vm1, %v279_v5  ;;  %v288_v14 = vpack.c.bf16 %v266_v12, %v265_v11  ;;  %v267_v16 = vld [vmem:[%s1260_s30 + $0xa0] sm:$0xff]  ;;  %v268_v17 = vld [vmem:[%s1260_s30 + $0xa8] sm:$0xff]  ;;  %v281_v18 = vpack.c.bf16 %v252_v15, %v251_v13  ;;  %v253_v20 = vld [vmem:[%s1260_s30 + $0x30] sm:$0xff]  ;;  %s557_s26 = scalar_lea.sflag [#allocation4], %s1254_s19  ;;  %s947_s9 = scalar_lea.vmem %s1413_s24, 4096 }
  0x72   : > { %751 = vmatprep.mubr.msk.bf16.mxu1 %vm309_vm1, %v287_v9  ;;  %v289_v19 = vpack.c.bf16 %v268_v17, %v267_v16  ;;  %736 = vmatmul.mubr.msk.bf16.vlgmr.msra.gmra.mrb[0].mxu0 %vm309_vm1, %v280_v10  ;;  %v254_v21 = vld [vmem:[%s1260_s30 + $0x38] sm:$0xff]  ;;  %v269_v22 = vld [vmem:[%s1260_s30 + $0xb0] sm:$0xff]  ;;  %v255_v24 = vld [vmem:[%s1260_s30 + $0x40] sm:$0xff]  ;;  %p948_p8 = scmp.ne.s32.totalorder %s1413_s24, %s947_s9  ;;  %p1494_p12 = scmp.ne.s32.totalorder %s1490_s27, 0 }
  0x73   : > { %752 = vmatmul.mubr.msk.bf16.vlgmr.msra.gmra.mrb[0].mxu1 %vm309_vm1, %v288_v14  ;;  %739 = vmatprep.mubr.msk.bf16.mxu0 %vm309_vm1, %v281_v18  ;;  %v270_v23 = vld [vmem:[%s1260_s30 + $0xb8] sm:$0xff]  ;;  %v256_v25 = vld [vmem:[%s1260_s30 + $0x48] sm:$0xff]  ;;  %v271_v26 = vld [vmem:[%s1260_s30 + $0xc0] sm:$0xff]  ;;  %v282_v28 = vpack.c.bf16 %v254_v21, %v253_v20  ;;  %s1042_s28 = smov [#allocation8]  }
  0x74   : > { %755 = vmatprep.mubr.msk.bf16.mxu1 %vm309_vm1, %v289_v19  ;;  %v272_v27 = vld [vmem:[%s1260_s30 + $0xc8] sm:$0xff]  ;;  %v290_v29 = vpack.c.bf16 %v270_v23, %v269_v22  ;;  %v283_v30 = vpack.c.bf16 %v256_v25, %v255_v24  ;;  %v257_v32 = vld [vmem:[%s1260_s30 + $0x50] sm:$0xff]  ;;  %v258_v33 = vld [vmem:[%s1260_s30 + $0x58] sm:$0xff]  ;;  %p949_p1 = pnand %p948_p8, %p1494_p12  ;;  %s951_s5 = sshll.u32 %s1042_s28, 4  ;;  %s952_s5 = int_to_ptr.vmem [resolvable:$false] %s951_s5 }
  0x75   : > { %v291_v31 = vpack.c.bf16 %v272_v27, %v271_v26  ;;  %v273_v34 = vld [vmem:[%s1260_s30 + $0xd0] sm:$0xff]  ;;  %v274_v35 = vld [vmem:[%s1260_s30 + $0xd8] sm:$0xff]  ;;  %v259_v36 = vld [vmem:[%s1260_s30 + $0x60] sm:$0xff]  ;;  %v284_v40 = vpack.c.bf16 %v258_v33, %v257_v32  ;;  %s953_s6 = scalar_lea.vmem %s952_s5, 8192  ;;  %p954_p3 = scmp.lt.s32.totalorder %s1413_s24, %s952_s5 }
  0x76   : > { %v260_v37 = vld [vmem:[%s1260_s30 + $0x68] sm:$0xff]  ;;  %v275_v38 = vld [vmem:[%s1260_s30 + $0xe0] sm:$0xff]  ;;  %v292_v41 = vpack.c.bf16 %v274_v35, %v273_v34  ;;  %v261_v44 = vld [vmem:[%s1260_s30 + $0x70] sm:$0xff]  ;;  %p950_p10 = pneg %p949_p1  ;;  %p955_p5 = scmp.lt.s32.totalorder %s953_s6, %s947_s9 }
  0x77   : > { %v276_v39 = vld [vmem:[%s1260_s30 + $0xe8] sm:$0xff]  ;;  %v285_v42 = vpack.c.bf16 %v260_v37, %v259_v36  ;;  %v262_v45 = vld [vmem:[%s1260_s30 + $0x78] sm:$0xff]  ;;  %v277_v46 = vld [vmem:[%s1260_s30 + $0xf0] sm:$0xff] }
  0x78   : > { %v293_v43 = vpack.c.bf16 %v276_v39, %v275_v38  ;;  %v278_v47 = vld [vmem:[%s1260_s30 + $0xf8] sm:$0xff]  ;;  %v286_v48 = vpack.c.bf16 %v262_v45, %v261_v44  ;;  %v1318_v50 = vld [vmem:[#allocation7] ss:$0 sm:$0xff]  ;;  %p956_p9 = por %p955_p5, %p954_p3 }
  0x79   : > { %v294_v49 = vpack.c.bf16 %v278_v47, %v277_v46 }
  0x7a   : > { %740 = vmatmul.mubr.msk.bf16.gmra.mrb[4].mxu0 %vm309_vm1, %v282_v28  ;;  %p957_p11 = pnand %p956_p9, %p950_p10 }
  0x7b   : > { %756 = vmatmul.mubr.msk.bf16.gmra.mrb[4].mxu1 %vm309_vm1, %v290_v29  ;;  %743 = vmatprep.mubr.msk.bf16.mxu0 %vm309_vm1, %v283_v30 }
  0x7c   : > { %759 = vmatprep.mubr.msk.bf16.mxu1 %vm309_vm1, %v291_v31 }
  0x82   : > { %744 = vmatmul.mubr.msk.bf16.gmra.mrb[8].mxu0 %vm309_vm1, %v284_v40 }
  0x83   : > { %760 = vmatmul.mubr.msk.bf16.gmra.mrb[8].mxu1 %vm309_vm1, %v292_v41  ;;  %747 = vmatprep.mubr.msk.bf16.mxu0 %vm309_vm1, %v285_v42 }
  0x84   : > { %763 = vmatprep.mubr.msk.bf16.mxu1 %vm309_vm1, %v293_v43 }
  0x8a   : > { %748 = vmatmul.mubr.msk.bf16.gmra.mrb[12].mxu0 %vm309_vm1, %v286_v48 }
  0x8b   : > { %764 = vmatmul.mubr.msk.bf16.gmra.mrb[12].mxu1 %vm309_vm1, %v294_v49 }
 0x145   : > { %v737_v51 = vpop.f32.mrb[0].mxu0 }
 0x146   : > { %v753_v52 = vpop.f32.mrb[0].mxu1  ;;  %v405_v53 = vadd.f32 %v737_v51, %v1318_v50  ;;  %v396_v55 = vpop.f32.mrb[1].mxu0 }
 0x147   : > { %v469_v54 = vadd.f32 %v753_v52, %v1318_v50  ;;  %v460_v56 = vpop.f32.mrb[1].mxu1  ;;  %v397_v57 = vadd.f32 %v1318_v50, %v396_v55  ;;  %v738_v59 = vpop.f32.mrb[2].mxu0 }
 0x148   : > { %v461_v58 = vadd.f32 %v1318_v50, %v460_v56  ;;  %v754_v60 = vpop.f32.mrb[2].mxu1  ;;  %526 = vst.msk [vmem:[%s1326_s20 + $0x10] sm:$0xff] %vm523_vm2, %v405_v53  ;;  %v408_v61 = vadd.f32 %v738_v59, %v1318_v50  ;;  %v399_v63 = vpop.f32.mrb[3].mxu0 }
 0x149   : > { %542 = vst.msk [vmem:[%s1326_s20 + $0x90] sm:$0xff] %vm523_vm2, %v469_v54  ;;  %v472_v62 = vadd.f32 %v754_v60, %v1318_v50  ;;  %v463_v0 = vpop.f32.mrb[3].mxu1  ;;  %524 = vst.msk [vmem:[%s1326_s20] sm:$0xff] %vm523_vm2, %v397_v57  ;;  %v400_v1 = vadd.f32 %v1318_v50, %v399_v63 }
 0x14a   : > { %540 = vst.msk [vmem:[%s1326_s20 + $0x80] sm:$0xff] %vm523_vm2, %v461_v58  ;;  %v464_v2 = vadd.f32 %v1318_v50, %v463_v0  ;;  %527 = vst.msk [vmem:[%s1326_s20 + $0x18] sm:$0xff] %vm523_vm2, %v408_v61 }
 0x14b   : > { %543 = vst.msk [vmem:[%s1326_s20 + $0x98] sm:$0xff] %vm523_vm2, %v472_v62  ;;  %525 = vst.msk [vmem:[%s1326_s20 + $0x8] sm:$0xff] %vm523_vm2, %v400_v1 }
 0x14c   : > { %541 = vst.msk [vmem:[%s1326_s20 + $0x88] sm:$0xff] %vm523_vm2, %v464_v2 }
 0x14d   : > { %v741_v3 = vpop.f32.mrb[4].mxu0 }
 0x14e   : > { %v757_v4 = vpop.f32.mrb[4].mxu1  ;;  %v421_v5 = vadd.f32 %v741_v3, %v1318_v50  ;;  %v412_v7 = vpop.f32.mrb[5].mxu0 }
 0x14f   : > { %v485_v6 = vadd.f32 %v757_v4, %v1318_v50  ;;  %v476_v8 = vpop.f32.mrb[5].mxu1  ;;  %v413_v9 = vadd.f32 %v1318_v50, %v412_v7  ;;  %v742_v11 = vpop.f32.mrb[6].mxu0 }
 0x150   : > { %v477_v10 = vadd.f32 %v1318_v50, %v476_v8  ;;  %v758_v12 = vpop.f32.mrb[6].mxu1  ;;  %530 = vst.msk [vmem:[%s1326_s20 + $0x30] sm:$0xff] %vm523_vm2, %v421_v5  ;;  %v424_v13 = vadd.f32 %v742_v11, %v1318_v50  ;;  %v415_v15 = vpop.f32.mrb[7].mxu0 }
 0x151   : > { %546 = vst.msk [vmem:[%s1326_s20 + $0xb0] sm:$0xff] %vm523_vm2, %v485_v6  ;;  %v488_v14 = vadd.f32 %v758_v12, %v1318_v50  ;;  %v479_v16 = vpop.f32.mrb[7].mxu1  ;;  %528 = vst.msk [vmem:[%s1326_s20 + $0x20] sm:$0xff] %vm523_vm2, %v413_v9  ;;  %v416_v17 = vadd.f32 %v1318_v50, %v415_v15 }
 0x152   : > { %544 = vst.msk [vmem:[%s1326_s20 + $0xa0] sm:$0xff] %vm523_vm2, %v477_v10  ;;  %v480_v18 = vadd.f32 %v1318_v50, %v479_v16  ;;  %531 = vst.msk [vmem:[%s1326_s20 + $0x38] sm:$0xff] %vm523_vm2, %v424_v13 }
 0x153   : > { %547 = vst.msk [vmem:[%s1326_s20 + $0xb8] sm:$0xff] %vm523_vm2, %v488_v14  ;;  %529 = vst.msk [vmem:[%s1326_s20 + $0x28] sm:$0xff] %vm523_vm2, %v416_v17 }
 0x154   : > { %545 = vst.msk [vmem:[%s1326_s20 + $0xa8] sm:$0xff] %vm523_vm2, %v480_v18 }
 0x155   : > { %v745_v19 = vpop.f32.mrb[8].mxu0 }
 0x156   : > { %v761_v20 = vpop.f32.mrb[8].mxu1  ;;  %v437_v21 = vadd.f32 %v745_v19, %v1318_v50  ;;  %v428_v23 = vpop.f32.mrb[9].mxu0 }
 0x157   : > { %v501_v22 = vadd.f32 %v761_v20, %v1318_v50  ;;  %v492_v24 = vpop.f32.mrb[9].mxu1  ;;  %v429_v25 = vadd.f32 %v1318_v50, %v428_v23  ;;  %v746_v27 = vpop.f32.mrb[10].mxu0 }
 0x158   : > { %v493_v26 = vadd.f32 %v1318_v50, %v492_v24  ;;  %v762_v28 = vpop.f32.mrb[10].mxu1  ;;  %534 = vst.msk [vmem:[%s1326_s20 + $0x50] sm:$0xff] %vm523_vm2, %v437_v21  ;;  %v440_v29 = vadd.f32 %v746_v27, %v1318_v50  ;;  %v431_v31 = vpop.f32.mrb[11].mxu0 }
 0x159   : > { %550 = vst.msk [vmem:[%s1326_s20 + $0xd0] sm:$0xff] %vm523_vm2, %v501_v22  ;;  %v504_v30 = vadd.f32 %v762_v28, %v1318_v50  ;;  %v495_v32 = vpop.f32.mrb[11].mxu1  ;;  %532 = vst.msk [vmem:[%s1326_s20 + $0x40] sm:$0xff] %vm523_vm2, %v429_v25  ;;  %v432_v33 = vadd.f32 %v1318_v50, %v431_v31 }
 0x15a   : > { %548 = vst.msk [vmem:[%s1326_s20 + $0xc0] sm:$0xff] %vm523_vm2, %v493_v26  ;;  %v496_v34 = vadd.f32 %v1318_v50, %v495_v32  ;;  %535 = vst.msk [vmem:[%s1326_s20 + $0x58] sm:$0xff] %vm523_vm2, %v440_v29 }
 0x15b   : > { %551 = vst.msk [vmem:[%s1326_s20 + $0xd8] sm:$0xff] %vm523_vm2, %v504_v30  ;;  %533 = vst.msk [vmem:[%s1326_s20 + $0x48] sm:$0xff] %vm523_vm2, %v432_v33 }
 0x15c   : > { %549 = vst.msk [vmem:[%s1326_s20 + $0xc8] sm:$0xff] %vm523_vm2, %v496_v34 }
 0x15d   : > { %v749_v35 = vpop.f32.mrb[12].mxu0 }
 0x15e   : > { %v765_v36 = vpop.f32.mrb[12].mxu1  ;;  %v453_v37 = vadd.f32 %v749_v35, %v1318_v50  ;;  %v444_v39 = vpop.f32.mrb[13].mxu0 }
 0x15f   : > { %v517_v38 = vadd.f32 %v765_v36, %v1318_v50  ;;  %v508_v40 = vpop.f32.mrb[13].mxu1  ;;  %v445_v41 = vadd.f32 %v1318_v50, %v444_v39  ;;  %v750_v43 = vpop.f32.mrb[14].mxu0 }
 0x160   : > { %v509_v42 = vadd.f32 %v1318_v50, %v508_v40  ;;  %v766_v44 = vpop.f32.mrb[14].mxu1  ;;  %538 = vst.msk [vmem:[%s1326_s20 + $0x70] sm:$0xff] %vm523_vm2, %v453_v37  ;;  %v456_v45 = vadd.f32 %v750_v43, %v1318_v50  ;;  %v447_v47 = vpop.f32.mrb[15].mxu0 }
 0x161   : > { %554 = vst.msk [vmem:[%s1326_s20 + $0xf0] sm:$0xff] %vm523_vm2, %v517_v38  ;;  %v520_v46 = vadd.f32 %v766_v44, %v1318_v50  ;;  %v511_v48 = vpop.f32.mrb[15].mxu1  ;;  %536 = vst.msk [vmem:[%s1326_s20 + $0x60] sm:$0xff] %vm523_vm2, %v445_v41  ;;  %v448_v49 = vadd.f32 %v1318_v50, %v447_v47 }
 0x162   : > { %552 = vst.msk [vmem:[%s1326_s20 + $0xe0] sm:$0xff] %vm523_vm2, %v509_v42  ;;  %v512_v51 = vadd.f32 %v1318_v50, %v511_v48  ;;  %539 = vst.msk [vmem:[%s1326_s20 + $0x78] sm:$0xff] %vm523_vm2, %v456_v45 }
 0x163   : > { %555 = vst.msk [vmem:[%s1326_s20 + $0xf8] sm:$0xff] %vm523_vm2, %v520_v46  ;;  %537 = vst.msk [vmem:[%s1326_s20 + $0x68] sm:$0xff] %vm523_vm2, %v448_v49 }
 0x164   : > { %553 = vst.msk [vmem:[%s1326_s20 + $0xe8] sm:$0xff] %vm523_vm2, %v512_v51 }
 0x165   : > { %960 = shalt.err (!%p957_p11)
}
 0x166   : > { %s961_s21 = scalar_lea.hbm %s1411_s8, 4096  ;;  %s965_s25 = scalar_lea.hbm %s1479_s3, 8192 }
 0x167   : > { %p962_p0 = scmp.ne.s32.totalorder %s1411_s8, %s961_s21  ;;  %p966_p6 = scmp.lt.u32.totalorder %s1411_s8, %s1479_s3 }
 0x168   : > { %p967_p7 = scmp.lt.u32.totalorder %s965_s25, %s961_s21  ;;  %p969_p8 = scmp.lt.u32.totalorder %s961_s21, %s1411_s8 }
 0x169   : > { %p963_p4 = pnand %p962_p0, %p1494_p12 }
 0x16a   : > { %p968_p2 = por %p967_p7, %p966_p6 }
 0x16b   : > { %p964_p13 = pneg %p963_p4 }
 0x16c   : > { %p970_p1 = por %p969_p8, %p968_p2 }
 0x16e   : > { %p971_p10 = pnand %p970_p1, %p964_p13 }
 0x170   : > { %974 = shalt.err (!%p971_p10)
}
 0x171   : > { %s1043_s20 = smov 128   ;;  %s1044_s22 = smov 8  }
 0x172   : > { %781 = dma.vmem_to_hbm [thread:$0]  (%p1494_p12), %s1413_s24, 4096, %s1411_s8, %s557_s26, %s1043_s20, %s1043_s20, %s1044_s22  }
 0x173 PF: > { %s586_s15 = sand.u32 1, %s1013_s12   ;;  %p1495_p3 = scmp.ne.s32.totalorder %s1487_s23, 0 }
 0x174   : > { %p1496_p5 = scmp.ge.s32.totalorder %s1033_s17, 2  ;;  %s587_s7 = scalar_lea.sflag [#allocation4], %s586_s15 }
 0x176   : > { %p795_p9 = pnand %p1496_p5, %p1495_p3 }
 0x178   : > { %1008 = dma.done.wait (!%p795_p9), %s587_s7, 4096  }
 0x179   : > { %1010 = vsyncadd (!%p795_p9), %s587_s7, 4294963200  ;;  %s20_s17 = sadd.s32 1, %s1033_s17   ;;  %s1497_s12 = smov %s1017_s13 }
 0x17a   : > { %p17_p11 = scmp.ge.s32.totalorder %s20_s17, 4   ;;  %s1498_s13 = smov %s1021_s14 }
 0x17b   : > { %s1499_s14 = smov %s1208_s4  ;;  %s1500_s15 = smov %s1029_s16 }
 0x17c   : > { %s1501_s16 = smov %s1503_s18  ;;  %19 = sbr.rel (!%p17_p11) target bundleno = 7 (0x7), region = 87 }
 0x183   :  { %592 = vsyncpa [#allocation3], 1 }
 0x184   :  { %594 = vsyncpa [#allocation3 + $0x1], 1 }
 0x185   :  { %595 = vsyncpa [#allocation6], 1 }
 0x186   :  { %596 = vsyncpa [#allocation4], 1 }
 0x187   :  { %598 = vsyncpa [#allocation4 + $0x1], 1 }

</bundles_post_ra>
